<compile_context>
chip_gen: v7x
topology: tpu7x:2x2x1
jax: 0.10.0
libtpu: 0.0.40
codegen_flags: <defaults>
</compile_context>

<pallas_src>
import jax
import jax.numpy as jnp
from jax import lax
from jax.experimental import pallas as pl
from jax.experimental.pallas import tpu as pltpu


def _taskb_head_kernel(
    idx_ref,                           # SMEM (B,) int32   (scalar prefetch)
    h1_hbm, h2_hbm, h3_hbm, h4_hbm,    # HBM  (B, S, H) f32 (memory_space=ANY)
    w_ref,                             # VMEM (C, 4H) bf16  (torch-native, lane-dense)
    b_ref,                             # VMEM (1, C)  f32
    out_ref,                           # VMEM (B_pad, C) f32
    x_ref,                             # VMEM (B_pad, 4H) f32 scratch
    sem,                               # single shared DMA semaphore, shape ()
):
    B = h1_hbm.shape[0]
    B_pad = x_ref.shape[0]
    H = h1_hbm.shape[-1]

    # Zero only the sublane-pad rows once (static slice) so the matmul never
    # sees stale VMEM; the pad rows of the output are sliced off in the wrapper.
    if B_pad > B:
        x_ref[pl.ds(B, B_pad - B), :] = jnp.zeros((B_pad - B, 4 * H), x_ref.dtype)

    # Hoist all SMEM scalar index reads before any DMA wait (avoids the
    # .wait() sst->sld forwarding stall on the scalar path).
    idxs = [idx_ref[b] for b in range(B)]

    # Gather hidden[b, indices[b], :] from each of the 4 layer outputs straight
    # into the hstack slab layout (row b, columns [l*H, (l+1)*H)).  All starts
    # are issued before any wait, on one shared semaphore, so the 4*B small
    # copies overlap.
    # Layer order l=0..3 == hidden_states[-1], [-2], [-3], [-4] (torch hstack
    # order), which must match the weight's input-feature ordering.
    copies = []
    for l, h_hbm in enumerate((h1_hbm, h2_hbm, h3_hbm, h4_hbm)):
        for b in range(B):
            cp = pltpu.make_async_copy(
                h_hbm.at[b, idxs[b]],           # (H,) row in HBM
                x_ref.at[b, pl.ds(l * H, H)],   # (H,) slot in the VMEM slab
                sem,
            )
            cp.start()
            copies.append(cp)
    # TODO(synk): at non-trivial B replace this unrolled start/wait pair with a
    # lax.fori_loop over b to keep the scalar/misc slots and live ranges small.
    for cp in copies:
        cp.wait()

    # Dropout == identity in eval mode.  bf16 operands, f32 accumulation.
    x = x_ref[...].astype(jnp.bfloat16)                       # (B_pad, 4H)
    acc = lax.dot_general(                                    # x @ W.T
        x, w_ref[...],
        dimension_numbers=(((1,), (1,)), ((), ())),
        preferred_element_type=jnp.float32,
    )                                                         # (B_pad, C)
    out_ref[...] = acc + b_ref[...]


def taskb_head(h_last, h_m1, h_m2, h_m3, indices, weight, bias):
    """out[b] = concat(h_last[b,i], h_m1[b,i], h_m2[b,i], h_m3[b,i]) @ weight.T + bias,
    with i = indices[b].  `weight` is in native torch nn.Linear layout (C, 4*H)."""
    B, S, H = h_last.shape
    C = weight.shape[0]
    assert weight.shape[1] == 4 * H
    B_pad = ((B + 7) // 8) * 8          # sublane-pad the matmul M dimension

    # Tiny (C, 4H) cast done once in the wrapper; lane-dense layout preserved.
    w_bf16 = weight.astype(jnp.bfloat16)
    bias2d = bias.reshape(1, C).astype(jnp.float32)

    hbm_spec = pl.BlockSpec(memory_space=pl.ANY)                      # manual DMA
    vmem_spec = pl.BlockSpec(memory_space=pltpu.MemorySpace.VMEM)     # whole array,
                                                                      # single buffer

    grid_spec = pltpu.PrefetchScalarGridSpec(
        num_scalar_prefetch=1,
        grid=(1,),                       # single invocation: weight DMA'd once,
                                         # one matmul, one (B_pad, C) store
        in_specs=[hbm_spec, hbm_spec, hbm_spec, hbm_spec, vmem_spec, vmem_spec],
        out_specs=vmem_spec,
        scratch_shapes=[
            pltpu.VMEM((B_pad, 4 * H), h_last.dtype),
            pltpu.SemaphoreType.DMA(()),
        ],
    )

    bytes_accessed = (
        4 * B * H * h_last.dtype.itemsize     # row gathers
        + w_bf16.size * 2                     # weight (bf16)
        + bias2d.size * 4                     # bias
        + B_pad * C * 4                       # output
        + B * 4                               # indices
    )
    cost = pl.CostEstimate(
        flops=2 * B_pad * 4 * H * C,
        transcendentals=0,
        bytes_accessed=int(bytes_accessed),
    )

    out_padded = pl.pallas_call(
        _taskb_head_kernel,
        out_shape=jax.ShapeDtypeStruct((B_pad, C), jnp.float32),
        grid_spec=grid_spec,
        compiler_params=pltpu.CompilerParams(
            dimension_semantics=("arbitrary",),
            # Lane-dense weight + slab + out are well under 1 MiB here; keep an
            # explicit, generous-but-bounded limit (safe on v7x's 64 MiB VMEM).
            vmem_limit_bytes=16 * 1024 * 1024,
        ),
        cost_estimate=cost,
    )(indices, h_last, h_m1, h_m2, h_m3, w_bf16, bias2d)

    return out_padded[:B]


if __name__ == "__main__":
    # Small, module-consistent shapes: batch=2, seq=8, hidden=1024 (BERT-large),
    # num_classes=8.
    B, S, H, C = 2, 8, 1024, 8

    key = jax.random.PRNGKey(0)
    k1, k2, k3, k4, k5, k6 = jax.random.split(key, 6)

    h_last = jax.random.normal(k1, (B, S, H), dtype=jnp.float32)
    h_m1 = jax.random.normal(k2, (B, S, H), dtype=jnp.float32)
    h_m2 = jax.random.normal(k3, (B, S, H), dtype=jnp.float32)
    h_m3 = jax.random.normal(k4, (B, S, H), dtype=jnp.float32)
    indices = jnp.array([1, 5], dtype=jnp.int32)

    # Deterministic synthetic parameters for nn.Linear(4*1024, num_classes),
    # stored in native torch layout (C, 4*H).
    weight = jax.random.normal(k5, (C, 4 * H), dtype=jnp.float32) * 0.02
    bias = jax.random.normal(k6, (C,), dtype=jnp.float32) * 0.02

    out = taskb_head(h_last, h_m1, h_m2, h_m3, indices, weight, bias)
    out = jax.block_until_ready(out)

    # Pure-JAX f32 reference for the head (kernel matmul runs in bf16 with f32
    # accumulation, hence the relaxed tolerance).
    batch_idx = jnp.arange(B)
    gathered = jnp.concatenate(
        [h[batch_idx, indices, :] for h in (h_last, h_m1, h_m2, h_m3)], axis=-1
    )
    ref = gathered @ weight.T + bias
    assert out.shape == (B, C)
    assert jnp.allclose(out, ref, atol=5e-2, rtol=5e-2)

    print("KERNEL_OK")
</pallas_src>

<mosaic_0001>
module attributes {stable_mosaic.version = 11 : i64} {
  func.func @_taskb_head_kernel(%arg0: i32, %arg1: memref<2xi32, #tpu.memory_space<smem>>, %arg2: memref<2x8x1024xf32, #tpu.memory_space<any>>, %arg3: memref<2x8x1024xf32, #tpu.memory_space<any>>, %arg4: memref<2x8x1024xf32, #tpu.memory_space<any>>, %arg5: memref<2x8x1024xf32, #tpu.memory_space<any>>, %arg6: memref<8x4096xbf16, #tpu.memory_space<vmem>>, %arg7: memref<1x8xf32, #tpu.memory_space<vmem>>, %arg8: memref<8x8xf32, #tpu.memory_space<vmem>>, %arg9: memref<8x4096xf32, #tpu.memory_space<vmem>>, %arg10: memref<!tpu.dma_semaphore, #tpu.memory_space<semaphore_mem>>) attributes {dimension_semantics = [#tpu.dimension_semantics<arbitrary>], iteration_bounds = array<i64: 1>, scalar_prefetch = 1 : i64, scratch_operands = 2 : i64, tpu.core_type = #tpu.core_type<tc>, window_params = [{}, {}, {}, {}, {pipeline_mode = #tpu.pipeline_mode<synchronous>, transform_indices = @transform_4, window_bounds = array<i64: 8, 4096>}, {pipeline_mode = #tpu.pipeline_mode<synchronous>, transform_indices = @transform_5, window_bounds = array<i64: 1, 8>}, {pipeline_mode = #tpu.pipeline_mode<synchronous>, transform_indices = @transform_6, window_bounds = array<i64: 8, 8>}]} {
    %cst = arith.constant 0.000000e+00 : f32
    %0 = vector.broadcast %cst : f32 to vector<6x4096xf32>
    %c2 = arith.constant 2 : index
    %c0 = arith.constant 0 : index
    %1 = vector.load %arg9[%c2, %c0] : memref<8x4096xf32, #tpu.memory_space<vmem>>, vector<6x4096xf32>
    tpu.vector_store %arg9[%c2, %c0], %0 {strides = array<i32>} : memref<8x4096xf32, #tpu.memory_space<vmem>>, vector<6x4096xf32>,
    %c0_0 = arith.constant 0 : index
    %2 = memref.load %arg1[%c0_0] : memref<2xi32, #tpu.memory_space<smem>>
    %c1 = arith.constant 1 : index
    %3 = memref.load %arg1[%c1] : memref<2xi32, #tpu.memory_space<smem>>
    %c0_i32 = arith.constant 0 : i32
    %c0_i32_1 = arith.constant 0 : i32
    %c0_i32_2 = arith.constant 0 : i32
    %4 = tpu.memref_slice %arg2[%c0_i32, %2, %c0_i32_2] : memref<2x8x1024xf32, #tpu.memory_space<any>> -> memref<1x1x1024xf32, #tpu.memory_space<any>>
    %5 = tpu.memref_squeeze %4 : memref<1x1x1024xf32, #tpu.memory_space<any>> -> memref<1024xf32, #tpu.memory_space<any>>
    %c0_i32_3 = arith.constant 0 : i32
    %6 = tpu.memref_slice %arg9[%c0_i32_1, %c0_i32_3] : memref<8x4096xf32, #tpu.memory_space<vmem>> -> memref<1x1024xf32, #tpu.memory_space<vmem>>
    %7 = tpu.memref_squeeze %6 : memref<1x1024xf32, #tpu.memory_space<vmem>> -> memref<1024xf32, #tpu.memory_space<vmem>>
    tpu.enqueue_dma source(%5 : memref<1024xf32, #tpu.memory_space<any>>) target(%7 : memref<1024xf32, #tpu.memory_space<vmem>>) target_semaphore(%arg10 : memref<!tpu.dma_semaphore, #tpu.memory_space<semaphore_mem>>)
    %c1_i32 = arith.constant 1 : i32
    %c1_i32_4 = arith.constant 1 : i32
    %c0_i32_5 = arith.constant 0 : i32
    %8 = tpu.memref_slice %arg2[%c1_i32, %3, %c0_i32_5] : memref<2x8x1024xf32, #tpu.memory_space<any>> -> memref<1x1x1024xf32, #tpu.memory_space<any>>
    %9 = tpu.memref_squeeze %8 : memref<1x1x1024xf32, #tpu.memory_space<any>> -> memref<1024xf32, #tpu.memory_space<any>>
    %c0_i32_6 = arith.constant 0 : i32
    %10 = tpu.memref_slice %arg9[%c1_i32_4, %c0_i32_6] : memref<8x4096xf32, #tpu.memory_space<vmem>> -> memref<1x1024xf32, #tpu.memory_space<vmem>>
    %11 = tpu.memref_squeeze %10 : memref<1x1024xf32, #tpu.memory_space<vmem>> -> memref<1024xf32, #tpu.memory_space<vmem>>
    tpu.enqueue_dma source(%9 : memref<1024xf32, #tpu.memory_space<any>>) target(%11 : memref<1024xf32, #tpu.memory_space<vmem>>) target_semaphore(%arg10 : memref<!tpu.dma_semaphore, #tpu.memory_space<semaphore_mem>>)
    %c0_i32_7 = arith.constant 0 : i32
    %c0_i32_8 = arith.constant 0 : i32
    %c0_i32_9 = arith.constant 0 : i32
    %12 = tpu.memref_slice %arg3[%c0_i32_7, %2, %c0_i32_9] : memref<2x8x1024xf32, #tpu.memory_space<any>> -> memref<1x1x1024xf32, #tpu.memory_space<any>>
    %13 = tpu.memref_squeeze %12 : memref<1x1x1024xf32, #tpu.memory_space<any>> -> memref<1024xf32, #tpu.memory_space<any>>
    %c1024_i32 = arith.constant 1024 : i32
    %14 = tpu.memref_slice %arg9[%c0_i32_8, %c1024_i32] : memref<8x4096xf32, #tpu.memory_space<vmem>> -> memref<1x1024xf32, #tpu.memory_space<vmem>>
    %15 = tpu.memref_squeeze %14 : memref<1x1024xf32, #tpu.memory_space<vmem>> -> memref<1024xf32, #tpu.memory_space<vmem>>
    tpu.enqueue_dma source(%13 : memref<1024xf32, #tpu.memory_space<any>>) target(%15 : memref<1024xf32, #tpu.memory_space<vmem>>) target_semaphore(%arg10 : memref<!tpu.dma_semaphore, #tpu.memory_space<semaphore_mem>>)
    %c1_i32_10 = arith.constant 1 : i32
    %c1_i32_11 = arith.constant 1 : i32
    %c0_i32_12 = arith.constant 0 : i32
    %16 = tpu.memref_slice %arg3[%c1_i32_10, %3, %c0_i32_12] : memref<2x8x1024xf32, #tpu.memory_space<any>> -> memref<1x1x1024xf32, #tpu.memory_space<any>>
    %17 = tpu.memref_squeeze %16 : memref<1x1x1024xf32, #tpu.memory_space<any>> -> memref<1024xf32, #tpu.memory_space<any>>
    %c1024_i32_13 = arith.constant 1024 : i32
    %18 = tpu.memref_slice %arg9[%c1_i32_11, %c1024_i32_13] : memref<8x4096xf32, #tpu.memory_space<vmem>> -> memref<1x1024xf32, #tpu.memory_space<vmem>>
    %19 = tpu.memref_squeeze %18 : memref<1x1024xf32, #tpu.memory_space<vmem>> -> memref<1024xf32, #tpu.memory_space<vmem>>
    tpu.enqueue_dma source(%17 : memref<1024xf32, #tpu.memory_space<any>>) target(%19 : memref<1024xf32, #tpu.memory_space<vmem>>) target_semaphore(%arg10 : memref<!tpu.dma_semaphore, #tpu.memory_space<semaphore_mem>>)
    %c0_i32_14 = arith.constant 0 : i32
    %c0_i32_15 = arith.constant 0 : i32
    %c0_i32_16 = arith.constant 0 : i32
    %20 = tpu.memref_slice %arg4[%c0_i32_14, %2, %c0_i32_16] : memref<2x8x1024xf32, #tpu.memory_space<any>> -> memref<1x1x1024xf32, #tpu.memory_space<any>>
    %21 = tpu.memref_squeeze %20 : memref<1x1x1024xf32, #tpu.memory_space<any>> -> memref<1024xf32, #tpu.memory_space<any>>
    %c2048_i32 = arith.constant 2048 : i32
    %22 = tpu.memref_slice %arg9[%c0_i32_15, %c2048_i32] : memref<8x4096xf32, #tpu.memory_space<vmem>> -> memref<1x1024xf32, #tpu.memory_space<vmem>>
    %23 = tpu.memref_squeeze %22 : memref<1x1024xf32, #tpu.memory_space<vmem>> -> memref<1024xf32, #tpu.memory_space<vmem>>
    tpu.enqueue_dma source(%21 : memref<1024xf32, #tpu.memory_space<any>>) target(%23 : memref<1024xf32, #tpu.memory_space<vmem>>) target_semaphore(%arg10 : memref<!tpu.dma_semaphore, #tpu.memory_space<semaphore_mem>>)
    %c1_i32_17 = arith.constant 1 : i32
    %c1_i32_18 = arith.constant 1 : i32
    %c0_i32_19 = arith.constant 0 : i32
    %24 = tpu.memref_slice %arg4[%c1_i32_17, %3, %c0_i32_19] : memref<2x8x1024xf32, #tpu.memory_space<any>> -> memref<1x1x1024xf32, #tpu.memory_space<any>>
    %25 = tpu.memref_squeeze %24 : memref<1x1x1024xf32, #tpu.memory_space<any>> -> memref<1024xf32, #tpu.memory_space<any>>
    %c2048_i32_20 = arith.constant 2048 : i32
    %26 = tpu.memref_slice %arg9[%c1_i32_18, %c2048_i32_20] : memref<8x4096xf32, #tpu.memory_space<vmem>> -> memref<1x1024xf32, #tpu.memory_space<vmem>>
    %27 = tpu.memref_squeeze %26 : memref<1x1024xf32, #tpu.memory_space<vmem>> -> memref<1024xf32, #tpu.memory_space<vmem>>
    tpu.enqueue_dma source(%25 : memref<1024xf32, #tpu.memory_space<any>>) target(%27 : memref<1024xf32, #tpu.memory_space<vmem>>) target_semaphore(%arg10 : memref<!tpu.dma_semaphore, #tpu.memory_space<semaphore_mem>>)
    %c0_i32_21 = arith.constant 0 : i32
    %c0_i32_22 = arith.constant 0 : i32
    %c0_i32_23 = arith.constant 0 : i32
    %28 = tpu.memref_slice %arg5[%c0_i32_21, %2, %c0_i32_23] : memref<2x8x1024xf32, #tpu.memory_space<any>> -> memref<1x1x1024xf32, #tpu.memory_space<any>>
    %29 = tpu.memref_squeeze %28 : memref<1x1x1024xf32, #tpu.memory_space<any>> -> memref<1024xf32, #tpu.memory_space<any>>
    %c3072_i32 = arith.constant 3072 : i32
    %30 = tpu.memref_slice %arg9[%c0_i32_22, %c3072_i32] : memref<8x4096xf32, #tpu.memory_space<vmem>> -> memref<1x1024xf32, #tpu.memory_space<vmem>>
    %31 = tpu.memref_squeeze %30 : memref<1x1024xf32, #tpu.memory_space<vmem>> -> memref<1024xf32, #tpu.memory_space<vmem>>
    tpu.enqueue_dma source(%29 : memref<1024xf32, #tpu.memory_space<any>>) target(%31 : memref<1024xf32, #tpu.memory_space<vmem>>) target_semaphore(%arg10 : memref<!tpu.dma_semaphore, #tpu.memory_space<semaphore_mem>>)
    %c1_i32_24 = arith.constant 1 : i32
    %c1_i32_25 = arith.constant 1 : i32
    %c0_i32_26 = arith.constant 0 : i32
    %32 = tpu.memref_slice %arg5[%c1_i32_24, %3, %c0_i32_26] : memref<2x8x1024xf32, #tpu.memory_space<any>> -> memref<1x1x1024xf32, #tpu.memory_space<any>>
    %33 = tpu.memref_squeeze %32 : memref<1x1x1024xf32, #tpu.memory_space<any>> -> memref<1024xf32, #tpu.memory_space<any>>
    %c3072_i32_27 = arith.constant 3072 : i32
    %34 = tpu.memref_slice %arg9[%c1_i32_25, %c3072_i32_27] : memref<8x4096xf32, #tpu.memory_space<vmem>> -> memref<1x1024xf32, #tpu.memory_space<vmem>>
    %35 = tpu.memref_squeeze %34 : memref<1x1024xf32, #tpu.memory_space<vmem>> -> memref<1024xf32, #tpu.memory_space<vmem>>
    tpu.enqueue_dma source(%33 : memref<1024xf32, #tpu.memory_space<any>>) target(%35 : memref<1024xf32, #tpu.memory_space<vmem>>) target_semaphore(%arg10 : memref<!tpu.dma_semaphore, #tpu.memory_space<semaphore_mem>>)
    %c0_i32_28 = arith.constant 0 : i32
    %c0_i32_29 = arith.constant 0 : i32
    %c0_i32_30 = arith.constant 0 : i32
    %36 = tpu.memref_slice %arg2[%c0_i32_28, %2, %c0_i32_30] : memref<2x8x1024xf32, #tpu.memory_space<any>> -> memref<1x1x1024xf32, #tpu.memory_space<any>>
    %37 = tpu.memref_squeeze %36 : memref<1x1x1024xf32, #tpu.memory_space<any>> -> memref<1024xf32, #tpu.memory_space<any>>
    %c0_i32_31 = arith.constant 0 : i32
    %38 = tpu.memref_slice %arg9[%c0_i32_29, %c0_i32_31] : memref<8x4096xf32, #tpu.memory_space<vmem>> -> memref<1x1024xf32, #tpu.memory_space<vmem>>
    %39 = tpu.memref_squeeze %38 : memref<1x1024xf32, #tpu.memory_space<vmem>> -> memref<1024xf32, #tpu.memory_space<vmem>>
    tpu.wait_dma2 semaphore(%arg10 : memref<!tpu.dma_semaphore, #tpu.memory_space<semaphore_mem>>) src(%37 : memref<1024xf32, #tpu.memory_space<any>>) dst(%39 : memref<1024xf32, #tpu.memory_space<vmem>>)
    %c1_i32_32 = arith.constant 1 : i32
    %c1_i32_33 = arith.constant 1 : i32
    %c0_i32_34 = arith.constant 0 : i32
    %40 = tpu.memref_slice %arg2[%c1_i32_32, %3, %c0_i32_34] : memref<2x8x1024xf32, #tpu.memory_space<any>> -> memref<1x1x1024xf32, #tpu.memory_space<any>>
    %41 = tpu.memref_squeeze %40 : memref<1x1x1024xf32, #tpu.memory_space<any>> -> memref<1024xf32, #tpu.memory_space<any>>
    %c0_i32_35 = arith.constant 0 : i32
    %42 = tpu.memref_slice %arg9[%c1_i32_33, %c0_i32_35] : memref<8x4096xf32, #tpu.memory_space<vmem>> -> memref<1x1024xf32, #tpu.memory_space<vmem>>
    %43 = tpu.memref_squeeze %42 : memref<1x1024xf32, #tpu.memory_space<vmem>> -> memref<1024xf32, #tpu.memory_space<vmem>>
    tpu.wait_dma2 semaphore(%arg10 : memref<!tpu.dma_semaphore, #tpu.memory_space<semaphore_mem>>) src(%41 : memref<1024xf32, #tpu.memory_space<any>>) dst(%43 : memref<1024xf32, #tpu.memory_space<vmem>>)
    %c0_i32_36 = arith.constant 0 : i32
    %c0_i32_37 = arith.constant 0 : i32
    %c0_i32_38 = arith.constant 0 : i32
    %44 = tpu.memref_slice %arg3[%c0_i32_36, %2, %c0_i32_38] : memref<2x8x1024xf32, #tpu.memory_space<any>> -> memref<1x1x1024xf32, #tpu.memory_space<any>>
    %45 = tpu.memref_squeeze %44 : memref<1x1x1024xf32, #tpu.memory_space<any>> -> memref<1024xf32, #tpu.memory_space<any>>
    %c1024_i32_39 = arith.constant 1024 : i32
    %46 = tpu.memref_slice %arg9[%c0_i32_37, %c1024_i32_39] : memref<8x4096xf32, #tpu.memory_space<vmem>> -> memref<1x1024xf32, #tpu.memory_space<vmem>>
    %47 = tpu.memref_squeeze %46 : memref<1x1024xf32, #tpu.memory_space<vmem>> -> memref<1024xf32, #tpu.memory_space<vmem>>
    tpu.wait_dma2 semaphore(%arg10 : memref<!tpu.dma_semaphore, #tpu.memory_space<semaphore_mem>>) src(%45 : memref<1024xf32, #tpu.memory_space<any>>) dst(%47 : memref<1024xf32, #tpu.memory_space<vmem>>)
    %c1_i32_40 = arith.constant 1 : i32
    %c1_i32_41 = arith.constant 1 : i32
    %c0_i32_42 = arith.constant 0 : i32
    %48 = tpu.memref_slice %arg3[%c1_i32_40, %3, %c0_i32_42] : memref<2x8x1024xf32, #tpu.memory_space<any>> -> memref<1x1x1024xf32, #tpu.memory_space<any>>
    %49 = tpu.memref_squeeze %48 : memref<1x1x1024xf32, #tpu.memory_space<any>> -> memref<1024xf32, #tpu.memory_space<any>>
    %c1024_i32_43 = arith.constant 1024 : i32
    %50 = tpu.memref_slice %arg9[%c1_i32_41, %c1024_i32_43] : memref<8x4096xf32, #tpu.memory_space<vmem>> -> memref<1x1024xf32, #tpu.memory_space<vmem>>
    %51 = tpu.memref_squeeze %50 : memref<1x1024xf32, #tpu.memory_space<vmem>> -> memref<1024xf32, #tpu.memory_space<vmem>>
    tpu.wait_dma2 semaphore(%arg10 : memref<!tpu.dma_semaphore, #tpu.memory_space<semaphore_mem>>) src(%49 : memref<1024xf32, #tpu.memory_space<any>>) dst(%51 : memref<1024xf32, #tpu.memory_space<vmem>>)
    %c0_i32_44 = arith.constant 0 : i32
    %c0_i32_45 = arith.constant 0 : i32
    %c0_i32_46 = arith.constant 0 : i32
    %52 = tpu.memref_slice %arg4[%c0_i32_44, %2, %c0_i32_46] : memref<2x8x1024xf32, #tpu.memory_space<any>> -> memref<1x1x1024xf32, #tpu.memory_space<any>>
    %53 = tpu.memref_squeeze %52 : memref<1x1x1024xf32, #tpu.memory_space<any>> -> memref<1024xf32, #tpu.memory_space<any>>
    %c2048_i32_47 = arith.constant 2048 : i32
    %54 = tpu.memref_slice %arg9[%c0_i32_45, %c2048_i32_47] : memref<8x4096xf32, #tpu.memory_space<vmem>> -> memref<1x1024xf32, #tpu.memory_space<vmem>>
    %55 = tpu.memref_squeeze %54 : memref<1x1024xf32, #tpu.memory_space<vmem>> -> memref<1024xf32, #tpu.memory_space<vmem>>
    tpu.wait_dma2 semaphore(%arg10 : memref<!tpu.dma_semaphore, #tpu.memory_space<semaphore_mem>>) src(%53 : memref<1024xf32, #tpu.memory_space<any>>) dst(%55 : memref<1024xf32, #tpu.memory_space<vmem>>)
    %c1_i32_48 = arith.constant 1 : i32
    %c1_i32_49 = arith.constant 1 : i32
    %c0_i32_50 = arith.constant 0 : i32
    %56 = tpu.memref_slice %arg4[%c1_i32_48, %3, %c0_i32_50] : memref<2x8x1024xf32, #tpu.memory_space<any>> -> memref<1x1x1024xf32, #tpu.memory_space<any>>
    %57 = tpu.memref_squeeze %56 : memref<1x1x1024xf32, #tpu.memory_space<any>> -> memref<1024xf32, #tpu.memory_space<any>>
    %c2048_i32_51 = arith.constant 2048 : i32
    %58 = tpu.memref_slice %arg9[%c1_i32_49, %c2048_i32_51] : memref<8x4096xf32, #tpu.memory_space<vmem>> -> memref<1x1024xf32, #tpu.memory_space<vmem>>
    %59 = tpu.memref_squeeze %58 : memref<1x1024xf32, #tpu.memory_space<vmem>> -> memref<1024xf32, #tpu.memory_space<vmem>>
    tpu.wait_dma2 semaphore(%arg10 : memref<!tpu.dma_semaphore, #tpu.memory_space<semaphore_mem>>) src(%57 : memref<1024xf32, #tpu.memory_space<any>>) dst(%59 : memref<1024xf32, #tpu.memory_space<vmem>>)
    %c0_i32_52 = arith.constant 0 : i32
    %c0_i32_53 = arith.constant 0 : i32
    %c0_i32_54 = arith.constant 0 : i32
    %60 = tpu.memref_slice %arg5[%c0_i32_52, %2, %c0_i32_54] : memref<2x8x1024xf32, #tpu.memory_space<any>> -> memref<1x1x1024xf32, #tpu.memory_space<any>>
    %61 = tpu.memref_squeeze %60 : memref<1x1x1024xf32, #tpu.memory_space<any>> -> memref<1024xf32, #tpu.memory_space<any>>
    %c3072_i32_55 = arith.constant 3072 : i32
    %62 = tpu.memref_slice %arg9[%c0_i32_53, %c3072_i32_55] : memref<8x4096xf32, #tpu.memory_space<vmem>> -> memref<1x1024xf32, #tpu.memory_space<vmem>>
    %63 = tpu.memref_squeeze %62 : memref<1x1024xf32, #tpu.memory_space<vmem>> -> memref<1024xf32, #tpu.memory_space<vmem>>
    tpu.wait_dma2 semaphore(%arg10 : memref<!tpu.dma_semaphore, #tpu.memory_space<semaphore_mem>>) src(%61 : memref<1024xf32, #tpu.memory_space<any>>) dst(%63 : memref<1024xf32, #tpu.memory_space<vmem>>)
    %c1_i32_56 = arith.constant 1 : i32
    %c1_i32_57 = arith.constant 1 : i32
    %c0_i32_58 = arith.constant 0 : i32
    %64 = tpu.memref_slice %arg5[%c1_i32_56, %3, %c0_i32_58] : memref<2x8x1024xf32, #tpu.memory_space<any>> -> memref<1x1x1024xf32, #tpu.memory_space<any>>
    %65 = tpu.memref_squeeze %64 : memref<1x1x1024xf32, #tpu.memory_space<any>> -> memref<1024xf32, #tpu.memory_space<any>>
    %c3072_i32_59 = arith.constant 3072 : i32
    %66 = tpu.memref_slice %arg9[%c1_i32_57, %c3072_i32_59] : memref<8x4096xf32, #tpu.memory_space<vmem>> -> memref<1x1024xf32, #tpu.memory_space<vmem>>
    %67 = tpu.memref_squeeze %66 : memref<1x1024xf32, #tpu.memory_space<vmem>> -> memref<1024xf32, #tpu.memory_space<vmem>>
    tpu.wait_dma2 semaphore(%arg10 : memref<!tpu.dma_semaphore, #tpu.memory_space<semaphore_mem>>) src(%65 : memref<1024xf32, #tpu.memory_space<any>>) dst(%67 : memref<1024xf32, #tpu.memory_space<vmem>>)
    %c0_60 = arith.constant 0 : index
    %c0_61 = arith.constant 0 : index
    %68 = vector.load %arg9[%c0_60, %c0_61] : memref<8x4096xf32, #tpu.memory_space<vmem>>, vector<8x4096xf32>
    %69 = arith.truncf %68 : vector<8x4096xf32> to vector<8x4096xbf16>
    %c0_62 = arith.constant 0 : index
    %c0_63 = arith.constant 0 : index
    %70 = vector.load %arg6[%c0_62, %c0_63] : memref<8x4096xbf16, #tpu.memory_space<vmem>>, vector<8x4096xbf16>
    %cst_64 = arith.constant dense<0.000000e+00> : vector<8x8xf32>
    %71 = tpu.matmul %69, %70, %cst_64 {dimension_numbers = #tpu.dot_dimension_numbers<[1], [1], [0], [0], [0, 0, 1, 0], [], []>} : vector<8x4096xbf16>, vector<8x4096xbf16>, vector<8x8xf32> -> vector<8x8xf32>
    %c0_65 = arith.constant 0 : index
    %c0_66 = arith.constant 0 : index
    %72 = vector.load %arg7[%c0_65, %c0_66] : memref<1x8xf32, #tpu.memory_space<vmem>>, vector<1x8xf32>
    %73 = vector.broadcast %72 : vector<1x8xf32> to vector<8x8xf32>
    %74 = arith.addf %71, %73 : vector<8x8xf32>
    %c0_67 = arith.constant 0 : index
    %c0_68 = arith.constant 0 : index
    %75 = vector.load %arg8[%c0_67, %c0_68] : memref<8x8xf32, #tpu.memory_space<vmem>>, vector<8x8xf32>
    tpu.vector_store %arg8[%c0_67, %c0_68], %74 {strides = array<i32>} : memref<8x8xf32, #tpu.memory_space<vmem>>, vector<8x8xf32>,
    return
  }
  func.func @transform_4(%arg0: i32, %arg1: memref<2xi32, #tpu.memory_space<smem>>) -> (i32, i32) {
    %c0_i32 = arith.constant 0 : i32
    %c0_i32_0 = arith.constant 0 : i32
    %c0_i32_1 = arith.constant 0 : i32
    return %c0_i32, %c0_i32_0 : i32, i32
  }
  func.func @transform_5(%arg0: i32, %arg1: memref<2xi32, #tpu.memory_space<smem>>) -> (i32, i32) {
    %c0_i32 = arith.constant 0 : i32
    %c0_i32_0 = arith.constant 0 : i32
    %c0_i32_1 = arith.constant 0 : i32
    return %c0_i32, %c0_i32_0 : i32, i32
  }
  func.func @transform_6(%arg0: i32, %arg1: memref<2xi32, #tpu.memory_space<smem>>) -> (i32, i32) {
    %c0_i32 = arith.constant 0 : i32
    %c0_i32_0 = arith.constant 0 : i32
    %c0_i32_1 = arith.constant 0 : i32
    return %c0_i32, %c0_i32_0 : i32, i32
  }
}

</mosaic_0001>

<bundles_post_ra>
// kernel: tpu_custom_call.1
= control target key start
LH: loop header
LB: loop body
LE: loop exit
PB: predicated region body
PF: predicated region fallthrough
CT: control target
= control target key end

     0   :  { %s1741_s0 = inlined_call_operand.hbm [shape: s32[2], index: 0, kind: input, shape index: {}]   ;;  %s1742_s1 = inlined_call_operand.hbm [shape: f32[2,8,1024], index: 1, kind: input, shape index: {}]   ;;  %s1743_s2 = inlined_call_operand.hbm [shape: f32[2,8,1024], index: 2, kind: input, shape index: {}]   ;;  %s1744_s3 = inlined_call_operand.hbm [shape: f32[2,8,1024], index: 3, kind: input, shape index: {}]   ;;  %s1745_s4 = inlined_call_operand.hbm [shape: f32[2,8,1024], index: 4, kind: input, shape index: {}]   ;;  %s1746_s5 = inlined_call_operand.hbm [shape: bf16[8,4096], index: 5, kind: input, shape index: {}]   ;;  %s1747_s6 = inlined_call_operand.vmem [shape: f32[1,8], index: 6, kind: input, shape index: {}]   ;;  %s1748_s7 = inlined_call_operand.hbm [shape: f32[8,8], index: 7, kind: output, shape index: {}]  }
   0x1   :  { %s1206_s26 = scalar_lea.hbm %s1741_s0, 16 }
   0x2   :  { %p1207_p0 = scmp.ne.s32.totalorder %s1741_s0, %s1206_s26  ;;  %p1210_p1 = scmp.lt.u32.totalorder %s1206_s26, %s1741_s0 }
   0x4   :  { %p1212_p2 = pnand %p1210_p1, %p1207_p0 }
   0x6   :  { %1215 = shalt.err (!%p1212_p2)  }
   0x7   :  { %s1464_s8 = smov [#allocation5]  }
   0x8   :  { %13 = dma.hbm_to_smem %s1741_s0, 16, %s1464_s8, [#allocation4] }
   0x9   :  { %1456 = dma.done.wait [#allocation4], 16 }
   0xa   :  { %1457 = vsyncadd [#allocation4], 4294967280 }
   0xb   :  { %15 = sfence }
   0xc   :  { %16 = vsyncpa [#allocation7], 0 }
   0xd   :  { %17 = vsyncpa [#allocation8], 0  ;;  %s1465_s11 = smov [#allocation6]   ;;  %s1216_s15 = scalar_lea.hbm %s1746_s5, 2048 }
   0xe   :  { %s24_s12 = sshll.u32 %s1465_s11, 4  ;;  %p1217_p3 = scmp.ne.s32.totalorder %s1746_s5, %s1216_s15  ;;  %s25_s12 = int_to_ptr.vmem [resolvable:$true] %s24_s12 }
   0xf   :  { %p1220_p4 = scmp.lt.u32.totalorder %s1216_s15, %s1746_s5 }
  0x11   :  { %p1222_p5 = pnand %p1220_p4, %p1217_p3 }
  0x13   :  { %1225 = shalt.err (!%p1222_p5)
}
  0x14   :  { %s1226_s0 = scalar_lea.vmem %s25_s12, 2048  ;;  %p1231_p7 = scmp.lt.s32.totalorder %s25_s12, %s25_s12 }
  0x15   :  { %p1227_p6 = scmp.ne.s32.totalorder %s25_s12, %s1226_s0  ;;  %p1232_p8 = scmp.lt.s32.totalorder %s1226_s0, %s1226_s0 }
  0x17   :  { %p1233_p9 = por %p1232_p8, %p1231_p7 }
  0x19   :  { %p1234_p10 = pnand %p1233_p9, %p1227_p6 }
  0x1b   :  { %1237 = shalt.err (!%p1234_p10)
}
  0x1c   :  { %27 = dma.hbm_to_vmem [thread:$0]  %s1746_s5, 2048, %s25_s12, [#allocation7]  }
  0x1d   :  { %1458 = dma.done.wait [#allocation7], 2048  }
  0x1e   :  { %1459 = vsyncadd [#allocation7], 4294965248  ;;  %v1466_v0 = vmov 0.0   ;;  %s66_s5 = sld [smem:[#allocation5]]  ;;  %s1467_s22 = smov [#allocation2]  }
  0x1f   :  { %34 = vst [vmem:[#allocation2] sm:$0xfc] %v1466_v0  ;;  %35 = vst [vmem:[#allocation2 + $0x8] sm:$0xfc] %v1466_v0  ;;  %s75_s23 = sshll.u32 %s1467_s22, 4  ;;  %s1544_s24 = sld [smem:[#allocation5 + $0x1]]  ;;  %s1542_s23 = int_to_ptr.vmem [resolvable:$true] %s75_s23 }
  0x20   :  { %36 = vst [vmem:[#allocation2 + $0x10] sm:$0xfc] %v1466_v0  ;;  %37 = vst [vmem:[#allocation2 + $0x18] sm:$0xfc] %v1466_v0  ;;  %s1468_s25 = smov [#allocation2 + $0x1]   ;;  %s1469_s27 = smov [#allocation2 + $0x40]  }
  0x21   :  { %38 = vst [vmem:[#allocation2 + $0x20] sm:$0xfc] %v1466_v0  ;;  %39 = vst [vmem:[#allocation2 + $0x28] sm:$0xfc] %v1466_v0  ;;  %s88_s26 = sshll.u32 %s1468_s25, 4  ;;  %s96_s28 = sshll.u32 %s1469_s27, 4  ;;  %s1546_s26 = int_to_ptr.vmem [resolvable:$true] %s88_s26  ;;  %s1548_s28 = int_to_ptr.vmem [resolvable:$true] %s96_s28 }
  0x22   :  { %40 = vst [vmem:[#allocation2 + $0x30] sm:$0xfc] %v1466_v0  ;;  %41 = vst [vmem:[#allocation2 + $0x38] sm:$0xfc] %v1466_v0  ;;  %s1470_s9 = smov [#allocation2 + $0x41]   ;;  %s1240_s21 = scalar_lea.hbm %s1742_s1, 2048 }
  0x23   :  { %42 = vst [vmem:[#allocation2 + $0x40] sm:$0xfc] %v1466_v0  ;;  %43 = vst [vmem:[#allocation2 + $0x48] sm:$0xfc] %v1466_v0  ;;  %s1550_s10 = sshll.u32 %s1470_s9, 4  ;;  %s1591_s10 = int_to_ptr.vmem [resolvable:$true] %s1550_s10 }
  0x24   :  { %44 = vst [vmem:[#allocation2 + $0x50] sm:$0xfc] %v1466_v0  ;;  %45 = vst [vmem:[#allocation2 + $0x58] sm:$0xfc] %v1466_v0  ;;  %s68_s29 = sshrl.u32 %s66_s5, 3  ;;  %s69_s30 = sand.u32 7, %s66_s5  }
  0x25   :  { %46 = vst [vmem:[#allocation2 + $0x60] sm:$0xfc] %v1466_v0  ;;  %47 = vst [vmem:[#allocation2 + $0x68] sm:$0xfc] %v1466_v0  ;;  %s1055_s8 = sshll.u32 %s68_s29, 6  ;;  %s79_s12 = sshrl.u32 %s1544_s24, 3 }
  0x26   :  { %48 = vst [vmem:[#allocation2 + $0x70] sm:$0xfc] %v1466_v0  ;;  %49 = vst [vmem:[#allocation2 + $0x78] sm:$0xfc] %v1466_v0  ;;  %s71_s11 = sadd.s32 %s1055_s8, %s69_s30  ;;  %s80_s14 = sand.u32 7, %s1544_s24  }
  0x27   :  { %50 = vst [vmem:[#allocation2 + $0x80] sm:$0xfc] %v1466_v0  ;;  %51 = vst [vmem:[#allocation2 + $0x88] sm:$0xfc] %v1466_v0  ;;  %s1553_s13 = sshll.u32 %s71_s11, 4  ;;  %s1057_s18 = sshll.u32 %s79_s12, 6 }
  0x28   :  { %52 = vst [vmem:[#allocation2 + $0x90] sm:$0xfc] %v1466_v0  ;;  %53 = vst [vmem:[#allocation2 + $0x98] sm:$0xfc] %v1466_v0  ;;  %s73_s17 = scalar_lea.hbm %s1742_s1, %s1553_s13 }
  0x29   :  { %54 = vst [vmem:[#allocation2 + $0xa0] sm:$0xfc] %v1466_v0  ;;  %55 = vst [vmem:[#allocation2 + $0xa8] sm:$0xfc] %v1466_v0  ;;  %s1238_s19 = scalar_lea.hbm %s73_s17, 128  ;;  %p1241_p12 = scmp.lt.u32.totalorder %s73_s17, %s1742_s1 }
  0x2a   :  { %56 = vst [vmem:[#allocation2 + $0xb0] sm:$0xfc] %v1466_v0  ;;  %57 = vst [vmem:[#allocation2 + $0xb8] sm:$0xfc] %v1466_v0  ;;  %p1239_p11 = scmp.ne.s32.totalorder %s73_s17, %s1238_s19  ;;  %p1242_p13 = scmp.lt.u32.totalorder %s1240_s21, %s1238_s19 }
  0x2b   :  { %58 = vst [vmem:[#allocation2 + $0xc0] sm:$0xfc] %v1466_v0  ;;  %59 = vst [vmem:[#allocation2 + $0xc8] sm:$0xfc] %v1466_v0  ;;  %p1244_p1 = scmp.lt.u32.totalorder %s1238_s19, %s73_s17 }
  0x2c   :  { %60 = vst [vmem:[#allocation2 + $0xd0] sm:$0xfc] %v1466_v0  ;;  %61 = vst [vmem:[#allocation2 + $0xd8] sm:$0xfc] %v1466_v0  ;;  %p1243_p0 = por %p1242_p13, %p1241_p12 }
  0x2d   :  { %62 = vst [vmem:[#allocation2 + $0xe0] sm:$0xfc] %v1466_v0  ;;  %63 = vst [vmem:[#allocation2 + $0xe8] sm:$0xfc] %v1466_v0 }
  0x2e   :  { %64 = vst [vmem:[#allocation2 + $0xf0] sm:$0xfc] %v1466_v0  ;;  %65 = vst [vmem:[#allocation2 + $0xf8] sm:$0xfc] %v1466_v0  ;;  %p1245_p2 = por %p1244_p1, %p1243_p0 }
  0x30   :  { %p1246_p3 = pnand %p1245_p2, %p1239_p11 }
  0x32   :  { %1249 = shalt.err (!%p1246_p3)  }
  0x33   :  { %s1250_s24 = scalar_lea.vmem %s1542_s23, 128  ;;  %s1573_s29 = scalar_lea.vmem %s1542_s23, 4096 }
  0x34   :  { %p1251_p4 = scmp.ne.s32.totalorder %s1542_s23, %s1250_s24  ;;  %p1255_p5 = scmp.lt.s32.totalorder %s1542_s23, %s1542_s23 }
  0x35   :  { %p1256_p6 = scmp.lt.s32.totalorder %s1573_s29, %s1250_s24 }
  0x37   :  { %p1257_p7 = por %p1256_p6, %p1255_p5 }
  0x39   :  { %p1258_p8 = pnand %p1257_p7, %p1251_p4 }
  0x3b   :  { %1261 = shalt.err (!%p1258_p8)  }
  0x3c   :  { %s1471_s30 = smov 128   ;;  %s1472_s8 = smov 1  }
  0x3d   :  { %78 = dma.hbm_to_vmem [thread:$0]  %s73_s17, 128, %s1542_s23, [#allocation3], %s1471_s30, %s1471_s30, %s1472_s8 }
  0x3e   :  { %s1023_s9 = sadd.s32 %s1057_s18, %s80_s14  ;;  %s1586_s15 = scalar_lea.hbm %s1743_s2, %s1553_s13 }
  0x3f   :  { %s1588_s16 = sshll.u32 %s1023_s9, 4 }
  0x40   :  { %s1025_s20 = scalar_lea.hbm %s1742_s1, %s1588_s16  ;;  %s1601_s17 = scalar_lea.hbm %s1743_s2, %s1588_s16 }
  0x41   :  { %s1026_s14 = scalar_lea.hbm %s1025_s20, 1024  ;;  %s1604_s18 = scalar_lea.hbm %s1601_s17, 1024 }
  0x42   :  { %s1286_s25 = scalar_lea.hbm %s1025_s20, 1152  ;;  %p1265_p10 = scmp.lt.u32.totalorder %s1026_s14, %s1742_s1 }
  0x43   :  { %p1263_p9 = scmp.ne.s32.totalorder %s1026_s14, %s1286_s25  ;;  %p1266_p11 = scmp.lt.u32.totalorder %s1240_s21, %s1286_s25 }
  0x44   :  { %p1268_p13 = scmp.lt.u32.totalorder %s1286_s25, %s1026_s14 }
  0x45   :  { %p1267_p12 = por %p1266_p11, %p1265_p10 }
  0x47   :  { %p1269_p0 = por %p1268_p13, %p1267_p12 }
  0x49   :  { %p1270_p1 = pnand %p1269_p0, %p1263_p9 }
  0x4b   :  { %1273 = shalt.err (!%p1270_p1)  }
  0x4c   :  { %s1274_s12 = scalar_lea.vmem %s1546_s26, 128  ;;  %p1279_p3 = scmp.lt.s32.totalorder %s1546_s26, %s1542_s23 }
  0x4d   :  { %p1275_p2 = scmp.ne.s32.totalorder %s1546_s26, %s1274_s12  ;;  %p1280_p4 = scmp.lt.s32.totalorder %s1573_s29, %s1274_s12 }
  0x4f   :  { %p1281_p5 = por %p1280_p4, %p1279_p3 }
  0x51   :  { %p1282_p6 = pnand %p1281_p5, %p1275_p2 }
  0x53   :  { %1285 = shalt.err (!%p1282_p6)  }
  0x54   :  { %91 = dma.hbm_to_vmem [thread:$0]  %s1026_s14, 128, %s1546_s26, [#allocation3], %s1471_s30, %s1471_s30, %s1472_s8 }
  0x55   :  { %s1287_s1 = scalar_lea.hbm %s1586_s15, 128  ;;  %s1289_s0 = scalar_lea.hbm %s1743_s2, 2048 }
  0x56   :  { %p1288_p7 = scmp.ne.s32.totalorder %s1586_s15, %s1287_s1  ;;  %p1290_p8 = scmp.lt.u32.totalorder %s1586_s15, %s1743_s2 }
  0x57   :  { %p1291_p9 = scmp.lt.u32.totalorder %s1289_s0, %s1287_s1  ;;  %p1293_p11 = scmp.lt.u32.totalorder %s1287_s1, %s1586_s15 }
  0x59   :  { %p1292_p10 = por %p1291_p9, %p1290_p8 }
  0x5b   :  { %p1294_p12 = por %p1293_p11, %p1292_p10 }
  0x5d   :  { %p1295_p13 = pnand %p1294_p12, %p1288_p7 }
  0x5f   :  { %1298 = shalt.err (!%p1295_p13)  }
  0x60   :  { %s1299_s26 = scalar_lea.vmem %s1548_s28, 128  ;;  %p1304_p1 = scmp.lt.s32.totalorder %s1548_s28, %s1542_s23 }
  0x61   :  { %p1300_p0 = scmp.ne.s32.totalorder %s1548_s28, %s1299_s26  ;;  %p1305_p2 = scmp.lt.s32.totalorder %s1573_s29, %s1299_s26 }
  0x63   :  { %p1306_p3 = por %p1305_p2, %p1304_p1 }
  0x65   :  { %p1307_p4 = pnand %p1306_p3, %p1300_p0 }
  0x67   :  { %1310 = shalt.err (!%p1307_p4)  }
  0x68   :  { %99 = dma.hbm_to_vmem [thread:$0]  %s1586_s15, 128, %s1548_s28, [#allocation3], %s1471_s30, %s1471_s30, %s1472_s8 }
  0x69   :  { %s1335_s22 = scalar_lea.hbm %s1601_s17, 1152  ;;  %p1314_p6 = scmp.lt.u32.totalorder %s1604_s18, %s1743_s2 }
  0x6a   :  { %p1312_p5 = scmp.ne.s32.totalorder %s1604_s18, %s1335_s22  ;;  %p1315_p7 = scmp.lt.u32.totalorder %s1289_s0, %s1335_s22 }
  0x6b   :  { %p1317_p9 = scmp.lt.u32.totalorder %s1335_s22, %s1604_s18 }
  0x6c   :  { %p1316_p8 = por %p1315_p7, %p1314_p6 }
  0x6e   :  { %p1318_p10 = por %p1317_p9, %p1316_p8 }
  0x70   :  { %p1319_p11 = pnand %p1318_p10, %p1312_p5 }
  0x72   :  { %1322 = shalt.err (!%p1319_p11)  }
  0x73   :  { %s1323_s27 = scalar_lea.vmem %s1591_s10, 128  ;;  %p1328_p13 = scmp.lt.s32.totalorder %s1591_s10, %s1542_s23 }
  0x74   :  { %p1324_p12 = scmp.ne.s32.totalorder %s1591_s10, %s1323_s27  ;;  %p1329_p0 = scmp.lt.s32.totalorder %s1573_s29, %s1323_s27 }
  0x76   :  { %p1330_p1 = por %p1329_p0, %p1328_p13 }
  0x78   :  { %p1331_p2 = pnand %p1330_p1, %p1324_p12 }
  0x7a   :  { %1334 = shalt.err (!%p1331_p2)  }
  0x7b   :  { %107 = dma.hbm_to_vmem [thread:$0]  %s1604_s18, 128, %s1591_s10, [#allocation3], %s1471_s30, %s1471_s30, %s1472_s8 }
  0x7c   :  { %s109_s15 = scalar_lea.hbm %s1744_s3, %s1553_s13  ;;  %s1473_s17 = smov [#allocation2 + $0x80]  }
  0x7d   :  { %s112_s24 = sshll.u32 %s1473_s17, 4  ;;  %s1043_s12 = scalar_lea.hbm %s1744_s3, %s1588_s16  ;;  %s113_s24 = int_to_ptr.vmem [resolvable:$true] %s112_s24 }
  0x7e   :  { %s1667_s1 = scalar_lea.hbm %s1043_s12, 1024  ;;  %s1336_s21 = scalar_lea.hbm %s109_s15, 128 }
  0x7f   :  { %p1337_p3 = scmp.ne.s32.totalorder %s109_s15, %s1336_s21  ;;  %s1338_s20 = scalar_lea.hbm %s1744_s3, 2048 }
  0x80   :  { %p1339_p4 = scmp.lt.u32.totalorder %s109_s15, %s1744_s3  ;;  %p1340_p5 = scmp.lt.u32.totalorder %s1338_s20, %s1336_s21 }
  0x81   :  { %p1342_p7 = scmp.lt.u32.totalorder %s1336_s21, %s109_s15 }
  0x82   :  { %p1341_p6 = por %p1340_p5, %p1339_p4 }
  0x84   :  { %p1343_p8 = por %p1342_p7, %p1341_p6 }
  0x86   :  { %p1344_p9 = pnand %p1343_p8, %p1337_p3 }
  0x88   :  { %1347 = shalt.err (!%p1344_p9)  }
  0x89   :  { %s1348_s5 = scalar_lea.vmem %s113_s24, 128  ;;  %p1353_p11 = scmp.lt.s32.totalorder %s113_s24, %s1542_s23 }
  0x8a   :  { %p1349_p10 = scmp.ne.s32.totalorder %s113_s24, %s1348_s5  ;;  %p1354_p12 = scmp.lt.s32.totalorder %s1573_s29, %s1348_s5 }
  0x8c   :  { %p1355_p13 = por %p1354_p12, %p1353_p11 }
  0x8e   :  { %p1356_p0 = pnand %p1355_p13, %p1349_p10 }
  0x90   :  { %1359 = shalt.err (!%p1356_p0)  }
  0x91   :  { %115 = dma.hbm_to_vmem [thread:$0]  %s109_s15, 128, %s113_s24, [#allocation3], %s1471_s30, %s1471_s30, %s1472_s8 }
  0x92   :  { %s1684_s14 = scalar_lea.hbm %s1745_s4, %s1553_s13  ;;  %s1474_s25 = smov [#allocation2 + $0x81]  }
  0x93   :  { %s120_s27 = sshll.u32 %s1474_s25, 4  ;;  %s1475_s2 = smov [#allocation2 + $0xc0]   ;;  %s121_s27 = int_to_ptr.vmem [resolvable:$true] %s120_s27 }
  0x94   :  { %s128_s28 = sshll.u32 %s1475_s2, 4  ;;  %s1384_s17 = scalar_lea.hbm %s1043_s12, 1152  ;;  %s129_s28 = int_to_ptr.vmem [resolvable:$true] %s128_s28 }
  0x95   :  { %p1361_p1 = scmp.ne.s32.totalorder %s1667_s1, %s1384_s17  ;;  %p1363_p2 = scmp.lt.u32.totalorder %s1667_s1, %s1744_s3 }
  0x96   :  { %p1364_p3 = scmp.lt.u32.totalorder %s1338_s20, %s1384_s17  ;;  %p1366_p5 = scmp.lt.u32.totalorder %s1384_s17, %s1667_s1 }
  0x98   :  { %p1365_p4 = por %p1364_p3, %p1363_p2 }
  0x9a   :  { %p1367_p6 = por %p1366_p5, %p1365_p4 }
  0x9c   :  { %p1368_p7 = pnand %p1367_p6, %p1361_p1 }
  0x9e   :  { %1371 = shalt.err (!%p1368_p7)  }
  0x9f   :  { %s1372_s15 = scalar_lea.vmem %s121_s27, 128  ;;  %p1377_p9 = scmp.lt.s32.totalorder %s121_s27, %s1542_s23 }
  0xa0   :  { %p1373_p8 = scmp.ne.s32.totalorder %s121_s27, %s1372_s15  ;;  %p1378_p10 = scmp.lt.s32.totalorder %s1573_s29, %s1372_s15 }
  0xa2   :  { %p1379_p11 = por %p1378_p10, %p1377_p9 }
  0xa4   :  { %p1380_p12 = pnand %p1379_p11, %p1373_p8 }
  0xa6   :  { %1383 = shalt.err (!%p1380_p12)  }
  0xa7   :  { %123 = dma.hbm_to_vmem [thread:$0]  %s1667_s1, 128, %s121_s27, [#allocation3], %s1471_s30, %s1471_s30, %s1472_s8 }
  0xa8   :  { %s1052_s24 = scalar_lea.hbm %s1745_s4, %s1588_s16  ;;  %s1385_s12 = scalar_lea.hbm %s1684_s14, 128 }
  0xa9   :  { %p1386_p13 = scmp.ne.s32.totalorder %s1684_s14, %s1385_s12  ;;  %s1387_s0 = scalar_lea.hbm %s1745_s4, 2048 }
  0xaa   :  { %p1388_p0 = scmp.lt.u32.totalorder %s1684_s14, %s1745_s4  ;;  %p1389_p1 = scmp.lt.u32.totalorder %s1387_s0, %s1385_s12 }
  0xab   :  { %p1391_p3 = scmp.lt.u32.totalorder %s1385_s12, %s1684_s14 }
  0xac   :  { %p1390_p2 = por %p1389_p1, %p1388_p0 }
  0xae   :  { %p1392_p4 = por %p1391_p3, %p1390_p2 }
  0xb0   :  { %p1393_p5 = pnand %p1392_p4, %p1386_p13 }
  0xb2   :  { %1396 = shalt.err (!%p1393_p5)  }
  0xb3   :  { %s1397_s1 = scalar_lea.vmem %s129_s28, 128  ;;  %p1402_p7 = scmp.lt.s32.totalorder %s129_s28, %s1542_s23 }
  0xb4   :  { %p1398_p6 = scmp.ne.s32.totalorder %s129_s28, %s1397_s1  ;;  %p1403_p8 = scmp.lt.s32.totalorder %s1573_s29, %s1397_s1 }
  0xb6   :  { %p1404_p9 = por %p1403_p8, %p1402_p7 }
  0xb8   :  { %p1405_p10 = pnand %p1404_p9, %p1398_p6 }
  0xba   :  { %1408 = shalt.err (!%p1405_p10)  }
  0xbb   :  { %131 = dma.hbm_to_vmem [thread:$0]  %s1684_s14, 128, %s129_s28, [#allocation3], %s1471_s30, %s1471_s30, %s1472_s8 }
  0xbc   :  { %s1053_s16 = scalar_lea.hbm %s1052_s24, 1024  ;;  %s1476_s18 = smov [#allocation2 + $0xc1]  }
  0xbd   :  { %s136_s5 = sshll.u32 %s1476_s18, 4  ;;  %s1433_s26 = scalar_lea.hbm %s1052_s24, 1152  ;;  %s137_s5 = int_to_ptr.vmem [resolvable:$true] %s136_s5 }
  0xbe   :  { %p1410_p11 = scmp.ne.s32.totalorder %s1053_s16, %s1433_s26  ;;  %p1412_p12 = scmp.lt.u32.totalorder %s1053_s16, %s1745_s4 }
  0xbf   :  { %p1413_p13 = scmp.lt.u32.totalorder %s1387_s0, %s1433_s26  ;;  %p1415_p1 = scmp.lt.u32.totalorder %s1433_s26, %s1053_s16 }
  0xc1   :  { %p1414_p0 = por %p1413_p13, %p1412_p12 }
  0xc3   :  { %p1416_p2 = por %p1415_p1, %p1414_p0 }
  0xc5   :  { %p1417_p3 = pnand %p1416_p2, %p1410_p11 }
  0xc7   :  { %1420 = shalt.err (!%p1417_p3)  }
  0xc8   :  { %s1421_s27 = scalar_lea.vmem %s137_s5, 128  ;;  %p1426_p5 = scmp.lt.s32.totalorder %s137_s5, %s1542_s23 }
  0xc9   :  { %p1422_p4 = scmp.ne.s32.totalorder %s137_s5, %s1421_s27  ;;  %p1427_p6 = scmp.lt.s32.totalorder %s1573_s29, %s1421_s27 }
  0xcb   :  { %p1428_p7 = por %p1427_p6, %p1426_p5 }
  0xcd   :  { %p1429_p8 = pnand %p1428_p7, %p1422_p4 }
  0xcf   :  { %1432 = shalt.err (!%p1429_p8)  }
  0xd0   :  { %139 = dma.hbm_to_vmem [thread:$0]  %s1053_s16, 128, %s137_s5, [#allocation3], %s1471_s30, %s1471_s30, %s1472_s8 }
  0xd1   :  { %1460 = dma.done.wait [#allocation3], 1024 }
  0xd2   :  { %1461 = vsyncadd [#allocation3], 4294966272  ;;  %v220_v1 = vld [vmem:[#allocation6] sm:$0xff]  ;;  %v157_v3 = vld [vmem:[#allocation2 + $0x8] sm:$0xff]  ;;  %s1477_s29 = smov [#allocation9]   ;;  %vm995_vm0 = vcmask 64512  }
  0xd3   :  { %v228_v2 = vld [vmem:[#allocation6 + $0x40] sm:$0xff]  ;;  %v1070_v4 = vcombine.high %v220_v1, %v220_v1  ;;  %v1069_v6 = vcombine.low %v220_v1, %v220_v1  ;;  %v173_v8 = vld [vmem:[#allocation2 + $0x88] sm:$0xff]  ;;  %v189_v10 = vpack.c.bf16 %v157_v3, %v157_v3  ;;  %v159_v17 = vld [vmem:[#allocation2 + $0x18] sm:$0xff]  ;;  %s1003_s30 = sshll.u32 %s1477_s29, 4  ;;  %s1004_s30 = int_to_ptr.vmem [resolvable:$true] %s1003_s30 }
  0xd4   :  { %v1086_v5 = vcombine.high %v228_v2, %v228_v2  ;;  %v1085_v7 = vcombine.low %v228_v2, %v228_v2  ;;  %v221_v9 = vld [vmem:[#allocation6 + $0x8] sm:$0xff]  ;;  %v205_v11 = vpack.c.bf16 %v173_v8, %v173_v8  ;;  %v156_v14 = vld [vmem:[#allocation2] sm:$0xff]  ;;  %v175_v18 = vld [vmem:[#allocation2 + $0x98] sm:$0xff]  ;;  %v191_v25 = vpack.c.bf16 %v159_v17, %v159_v17  ;;  %s1434_s8 = scalar_lea.vmem %s1004_s30, 128  ;;  %p1439_p10 = scmp.lt.s32.totalorder %s1004_s30, %s1004_s30 }
  0xd5   :  { %v229_v12 = vld [vmem:[#allocation6 + $0x48] sm:$0xff]  ;;  %355 = vmatprep.subr.bf16.mxu1 %v1070_v4  ;;  %v1072_v13 = vcombine.high %v221_v9, %v221_v9  ;;  %v172_v15 = vld [vmem:[#allocation2 + $0x80] sm:$0xff]  ;;  %387 = vmatprep.mubr.bf16.mxu1 %v189_v10  ;;  %v188_v19 = vpack.c.bf16 %v156_v14, %v156_v14  ;;  %v222_v21 = vld [vmem:[#allocation6 + $0x10] sm:$0xff]  ;;  %v1071_v23 = vcombine.low %v221_v9, %v221_v9  ;;  %p1435_p9 = scmp.ne.s32.totalorder %s1004_s30, %s1434_s8  ;;  %p1440_p11 = scmp.lt.s32.totalorder %s1434_s8, %s1434_s8 }
  0xd6   :  { %675 = vmatprep.subr.bf16.mxu0 %v1086_v5  ;;  %356 = vmatpush1.bf16.xpose.msra.mxu1 %v1069_v6  ;;  %v1088_v16 = vcombine.high %v229_v12, %v229_v12  ;;  %v204_v20 = vpack.c.bf16 %v172_v15, %v172_v15  ;;  %v230_v22 = vld [vmem:[#allocation6 + $0x50] sm:$0xff]  ;;  %v1087_v24 = vcombine.low %v229_v12, %v229_v12  ;;  %v161_v31 = vld [vmem:[#allocation2 + $0x28] sm:$0xff]  ;;  %v223_v35 = vld [vmem:[#allocation6 + $0x18] sm:$0xff] }
  0xd7   :  { %676 = vmatpush1.bf16.xpose.msra.mxu0 %v1085_v7  ;;  %707 = vmatprep.mubr.bf16.mxu0 %v205_v11  ;;  %v207_v26 = vpack.c.bf16 %v175_v18, %v175_v18  ;;  %v1074_v27 = vcombine.high %v222_v21, %v222_v21  ;;  %v1090_v28 = vcombine.high %v230_v22, %v230_v22  ;;  %v158_v29 = vld [vmem:[#allocation2 + $0x10] sm:$0xff]  ;;  %v177_v32 = vld [vmem:[#allocation2 + $0xa8] sm:$0xff]  ;;  %v231_v36 = vld [vmem:[#allocation6 + $0x58] sm:$0xff]  ;;  %p1441_p12 = por %p1440_p11, %p1439_p10 }
  0xd8   :  { %395 = vmatprep.subr.bf16.mxu1 %v1072_v13  ;;  %715 = vmatprep.subr.bf16.mxu0 %v1088_v16  ;;  %v174_v30 = vld [vmem:[#allocation2 + $0x90] sm:$0xff]  ;;  %v190_v33 = vpack.c.bf16 %v158_v29, %v158_v29  ;;  %v1073_v37 = vcombine.low %v222_v21, %v222_v21  ;;  %v1089_v38 = vcombine.low %v230_v22, %v230_v22  ;;  %v160_v43 = vld [vmem:[#allocation2 + $0x20] sm:$0xff]  ;;  %v163_v45 = vld [vmem:[#allocation2 + $0x38] sm:$0xff] }
  0xd9   :  { %v206_v34 = vpack.c.bf16 %v174_v30, %v174_v30  ;;  %v193_v39 = vpack.c.bf16 %v161_v31, %v161_v31  ;;  %v209_v40 = vpack.c.bf16 %v177_v32, %v177_v32  ;;  %v1076_v41 = vcombine.high %v223_v35, %v223_v35  ;;  %v176_v44 = vld [vmem:[#allocation2 + $0xa0] sm:$0xff]  ;;  %v179_v46 = vld [vmem:[#allocation2 + $0xb8] sm:$0xff]  ;;  %v162_v57 = vld [vmem:[#allocation2 + $0x30] sm:$0xff]  ;;  %p1442_p13 = pnand %p1441_p12, %p1435_p9 }
  0xda   :  { %v1092_v42 = vcombine.high %v231_v36, %v231_v36  ;;  %v192_v47 = vpack.c.bf16 %v160_v43, %v160_v43  ;;  %v208_v48 = vpack.c.bf16 %v176_v44, %v176_v44  ;;  %v224_v49 = vld [vmem:[#allocation6 + $0x20] sm:$0xff]  ;;  %v1075_v51 = vcombine.low %v223_v35, %v223_v35  ;;  %v178_v58 = vld [vmem:[#allocation2 + $0xb0] sm:$0xff]  ;;  %v165_v59 = vld [vmem:[#allocation2 + $0x48] sm:$0xff] }
  0xdb   :  { %v232_v50 = vld [vmem:[#allocation6 + $0x60] sm:$0xff]  ;;  %v1091_v52 = vcombine.low %v231_v36, %v231_v36  ;;  %v195_v53 = vpack.c.bf16 %v163_v45, %v163_v45  ;;  %v211_v54 = vpack.c.bf16 %v179_v46, %v179_v46  ;;  %v1078_v55 = vcombine.high %v224_v49, %v224_v49  ;;  %v181_v60 = vld [vmem:[#allocation2 + $0xc8] sm:$0xff]  ;;  %v167_v9 = vld [vmem:[#allocation2 + $0x58] sm:$0xff] }
  0xdc   :  { %v1094_v56 = vcombine.high %v232_v50, %v232_v50  ;;  %v194_v61 = vpack.c.bf16 %v162_v57, %v162_v57  ;;  %v210_v62 = vpack.c.bf16 %v178_v58, %v178_v58  ;;  %v225_v63 = vld [vmem:[#allocation6 + $0x28] sm:$0xff]  ;;  %v1077_v1 = vcombine.low %v224_v49, %v224_v49  ;;  %v164_v7 = vld [vmem:[#allocation2 + $0x40] sm:$0xff]  ;;  %v183_v10 = vld [vmem:[#allocation2 + $0xd8] sm:$0xff] }
  0xdd   :  { %388 = vmatmul.mubr.bf16.vlgmr.msra.gmra.mrb[0].mxu1 %v188_v19  ;;  %v233_v0 = vld [vmem:[#allocation6 + $0x68] sm:$0xff]  ;;  %v1093_v2 = vcombine.low %v232_v50, %v232_v50  ;;  %v197_v3 = vpack.c.bf16 %v165_v59, %v165_v59  ;;  %v213_v4 = vpack.c.bf16 %v181_v60, %v181_v60  ;;  %v1080_v5 = vcombine.high %v225_v63, %v225_v63  ;;  %v180_v8 = vld [vmem:[#allocation2 + $0xc0] sm:$0xff]  ;;  %v226_v13 = vld [vmem:[#allocation6 + $0x30] sm:$0xff] }
  0xde   :  { %708 = vmatmul.mubr.bf16.vlgmr.msra.gmra.mrb[0].mxu0 %v204_v20  ;;  %396 = vmatpush1.bf16.xpose.msra.mxu1 %v1071_v23  ;;  %v1096_v6 = vcombine.high %v233_v0, %v233_v0  ;;  %v196_v11 = vpack.c.bf16 %v164_v7, %v164_v7  ;;  %v212_v12 = vpack.c.bf16 %v180_v8, %v180_v8  ;;  %v234_v14 = vld [vmem:[#allocation6 + $0x70] sm:$0xff]  ;;  %v169_v23 = vld [vmem:[#allocation2 + $0x68] sm:$0xff]  ;;  %v168_v35 = vld [vmem:[#allocation2 + $0x60] sm:$0xff] }
  0xdf   :  { %716 = vmatpush1.bf16.xpose.msra.mxu0 %v1087_v24  ;;  %427 = vmatprep.mubr.bf16.mxu1 %v191_v25  ;;  %v1079_v15 = vcombine.low %v225_v63, %v225_v63  ;;  %v1095_v16 = vcombine.low %v233_v0, %v233_v0  ;;  %v199_v17 = vpack.c.bf16 %v167_v9, %v167_v9  ;;  %v166_v21 = vld [vmem:[#allocation2 + $0x50] sm:$0xff]  ;;  %v185_v24 = vld [vmem:[#allocation2 + $0xe8] sm:$0xff]  ;;  %v184_v36 = vld [vmem:[#allocation2 + $0xe0] sm:$0xff] }
  0xe0   :  { %747 = vmatprep.mubr.bf16.mxu0 %v207_v26  ;;  %435 = vmatprep.subr.bf16.mxu1 %v1074_v27  ;;  %v215_v18 = vpack.c.bf16 %v183_v10, %v183_v10  ;;  %v1082_v19 = vcombine.high %v226_v13, %v226_v13  ;;  %v1098_v20 = vcombine.high %v234_v14, %v234_v14  ;;  %v182_v22 = vld [vmem:[#allocation2 + $0xd0] sm:$0xff]  ;;  %v227_v27 = vld [vmem:[#allocation6 + $0x38] sm:$0xff]  ;;  %v1068_v49 = vld [vmem:[%s1747_s6] ss:$0 sm:$0xff] }
  0xe1   :  { %755 = vmatprep.subr.bf16.mxu0 %v1090_v28  ;;  %v198_v25 = vpack.c.bf16 %v166_v21, %v166_v21  ;;  %v214_v26 = vpack.c.bf16 %v182_v22, %v182_v22  ;;  %v235_v28 = vld [vmem:[#allocation6 + $0x78] sm:$0xff]  ;;  %v1081_v29 = vcombine.low %v226_v13, %v226_v13  ;;  %v1097_v30 = vcombine.low %v234_v14, %v234_v14  ;;  %v170_v45 = vld [vmem:[#allocation2 + $0x70] sm:$0xff] }
  0xe2   :  { %v201_v31 = vpack.c.bf16 %v169_v23, %v169_v23  ;;  %v217_v32 = vpack.c.bf16 %v185_v24, %v185_v24  ;;  %v186_v46 = vld [vmem:[#allocation2 + $0xf0] sm:$0xff] }
  0xe9   :  { %428 = vmatmul.mubr.bf16.vlgmr.msra.gmra.mrb[0].mxu1 %v190_v33  ;;  %v1084_v33 = vcombine.high %v227_v27, %v227_v27 }
  0xea   :  { %748 = vmatmul.mubr.bf16.vlgmr.msra.gmra.mrb[0].mxu0 %v206_v34  ;;  %436 = vmatpush1.bf16.xpose.msra.mxu1 %v1073_v37  ;;  %v1100_v34 = vcombine.high %v235_v28, %v235_v28  ;;  %v171_v37 = vld [vmem:[#allocation2 + $0x78] sm:$0xff] }
  0xeb   :  { %756 = vmatpush1.bf16.xpose.msra.mxu0 %v1089_v38  ;;  %467 = vmatprep.mubr.bf16.mxu1 %v193_v39  ;;  %v187_v38 = vld [vmem:[#allocation2 + $0xf8] sm:$0xff]  ;;  %v200_v39 = vpack.c.bf16 %v168_v35, %v168_v35  ;;  %v203_v43 = vpack.c.bf16 %v171_v37, %v171_v37 }
  0xec   :  { %787 = vmatprep.mubr.bf16.mxu0 %v209_v40  ;;  %475 = vmatprep.subr.bf16.mxu1 %v1076_v41  ;;  %v216_v40 = vpack.c.bf16 %v184_v36, %v184_v36  ;;  %v1083_v41 = vcombine.low %v227_v27, %v227_v27  ;;  %v219_v44 = vpack.c.bf16 %v187_v38, %v187_v38 }
  0xed   :  { %795 = vmatprep.subr.bf16.mxu0 %v1092_v42  ;;  %v1099_v42 = vcombine.low %v235_v28, %v235_v28 }
  0xf5   :  { %468 = vmatmul.mubr.bf16.vlgmr.msra.gmra.mrb[0].mxu1 %v192_v47  ;;  %v202_v47 = vpack.c.bf16 %v170_v45, %v170_v45 }
  0xf6   :  { %788 = vmatmul.mubr.bf16.vlgmr.msra.gmra.mrb[0].mxu0 %v208_v48  ;;  %476 = vmatpush1.bf16.xpose.msra.mxu1 %v1075_v51  ;;  %v218_v48 = vpack.c.bf16 %v186_v46, %v186_v46 }
  0xf7   :  { %796 = vmatpush1.bf16.xpose.msra.mxu0 %v1091_v52  ;;  %507 = vmatprep.mubr.bf16.mxu1 %v195_v53 }
  0xf8   :  { %827 = vmatprep.mubr.bf16.mxu0 %v211_v54  ;;  %515 = vmatprep.subr.bf16.mxu1 %v1078_v55 }
  0xf9   :  { %835 = vmatprep.subr.bf16.mxu0 %v1094_v56 }
 0x101   :  { %508 = vmatmul.mubr.bf16.vlgmr.msra.gmra.mrb[0].mxu1 %v194_v61 }
 0x102   :  { %828 = vmatmul.mubr.bf16.vlgmr.msra.gmra.mrb[0].mxu0 %v210_v62  ;;  %516 = vmatpush1.bf16.xpose.msra.mxu1 %v1077_v1 }
 0x103   :  { %836 = vmatpush1.bf16.xpose.msra.mxu0 %v1093_v2  ;;  %547 = vmatprep.mubr.bf16.mxu1 %v197_v3 }
 0x104   :  { %867 = vmatprep.mubr.bf16.mxu0 %v213_v4  ;;  %555 = vmatprep.subr.bf16.mxu1 %v1080_v5 }
 0x105   :  { %875 = vmatprep.subr.bf16.mxu0 %v1096_v6 }
 0x10d   :  { %548 = vmatmul.mubr.bf16.vlgmr.msra.gmra.mrb[0].mxu1 %v196_v11 }
 0x10e   :  { %868 = vmatmul.mubr.bf16.vlgmr.msra.gmra.mrb[0].mxu0 %v212_v12  ;;  %556 = vmatpush1.bf16.xpose.msra.mxu1 %v1079_v15 }
 0x10f   :  { %876 = vmatpush1.bf16.xpose.msra.mxu0 %v1095_v16  ;;  %587 = vmatprep.mubr.bf16.mxu1 %v199_v17 }
 0x110   :  { %907 = vmatprep.mubr.bf16.mxu0 %v215_v18  ;;  %595 = vmatprep.subr.bf16.mxu1 %v1082_v19 }
 0x111   :  { %915 = vmatprep.subr.bf16.mxu0 %v1098_v20 }
 0x119   :  { %588 = vmatmul.mubr.bf16.vlgmr.msra.gmra.mrb[0].mxu1 %v198_v25 }
 0x11a   :  { %908 = vmatmul.mubr.bf16.vlgmr.msra.gmra.mrb[0].mxu0 %v214_v26  ;;  %596 = vmatpush1.bf16.xpose.msra.mxu1 %v1081_v29 }
 0x11b   :  { %916 = vmatpush1.bf16.xpose.msra.mxu0 %v1097_v30  ;;  %627 = vmatprep.mubr.bf16.mxu1 %v201_v31 }
 0x11c   :  { %947 = vmatprep.mubr.bf16.mxu0 %v217_v32  ;;  %635 = vmatprep.subr.bf16.mxu1 %v1084_v33 }
 0x11d   :  { %955 = vmatprep.subr.bf16.mxu0 %v1100_v34 }
 0x125   :  { %628 = vmatmul.mubr.bf16.vlgmr.msra.gmra.mrb[0].mxu1 %v200_v39 }
 0x126   :  { %948 = vmatmul.mubr.bf16.vlgmr.msra.gmra.mrb[0].mxu0 %v216_v40  ;;  %636 = vmatpush1.bf16.xpose.msra.mxu1 %v1083_v41 }
 0x127   :  { %956 = vmatpush1.bf16.xpose.msra.mxu0 %v1099_v42  ;;  %667 = vmatprep.mubr.bf16.mxu1 %v203_v43 }
 0x128   :  { %987 = vmatprep.mubr.bf16.mxu0 %v219_v44 }
 0x131   :  { %668 = vmatmul.mubr.bf16.vlgmr.msra.gmra.mrb[0].mxu1 %v202_v47 }
 0x132   :  { %988 = vmatmul.mubr.bf16.vlgmr.msra.gmra.mrb[0].mxu0 %v218_v48 }
 0x204   :  { %v669_v50 = vpop.f32.mrb[0].mxu1 }
 0x205   :  { %v989_v51 = vpop.f32.mrb[0].mxu0  ;;  %v1102_v52 = vadd.f32 %v1068_v49, %v669_v50  ;;  %v671_v53 = vpop.f32.mrb[1].mxu1 }
 0x206   :  { %v991_v54 = vpop.f32.mrb[1].mxu0  ;;  %v672_v55 = vpop.f32.mrb[2].mxu1 }
 0x207   :  { %v992_v56 = vpop.f32.mrb[2].mxu0  ;;  %v1103_v57 = vadd.f32 %v1102_v52, %v989_v51  ;;  %v673_v58 = vpop.f32.mrb[3].mxu1 }
 0x208   :  { %v993_v59 = vpop.f32.mrb[3].mxu0 }
 0x209   :  { %996 = vst.msk [vmem:[#allocation9] sm:$0xff] %vm995_vm0, %v1103_v57 }
 0x20a   :  { %1445 = shalt.err (!%p1442_p13)
}
 0x20b   :  { %s1446_s2 = scalar_lea.hbm %s1748_s7, 128 }
 0x20c   :  { %p1447_p0 = scmp.ne.s32.totalorder %s1748_s7, %s1446_s2  ;;  %p1450_p1 = scmp.lt.u32.totalorder %s1446_s2, %s1748_s7 }
 0x20e   :  { %p1452_p2 = pnand %p1450_p1, %p1447_p0 }
 0x210   :  { %1455 = shalt.err (!%p1452_p2)
}
 0x211   :  { %1006 = dma.vmem_to_hbm [thread:$0]  %s1004_s30, 128, %s1748_s7, [#allocation8]  }
 0x212   :  { %1462 = dma.done.wait [#allocation8], 128  }
 0x213   :  { %1463 = vsyncadd [#allocation8], 4294967168 }
 0x214   :  { %1010 = vsyncpa [#allocation7], 1 }
 0x215   :  { %1011 = vsyncpa [#allocation8], 1 }
 0x216   :  { %1012 = vsyncmov [#allocation3] }
 0x219   :  { %s1013_s13 = vpop.sfrf %1012 }
 0x21a   :  { %p1101_p3 = scmp.ne.s32.totalorder %s1013_s13, 0 }
 0x21c   :  { %1017 = shalt.err (%p1101_p3)  }

</bundles_post_ra>
